<compile_context>
chip_gen: v6e
topology: v6e:2x2x1
jax: 0.10.0
libtpu: 0.0.40
codegen_flags: <defaults>
</compile_context>

<pallas_src>
import functools

import jax
import jax.numpy as jnp
from jax.experimental import pallas as pl
from jax.experimental.pallas import tpu as pltpu

SIGMA_DATA = 0.5


def _edm_kernel(coef_ref, x_ref, w1t_ref, film_ref, w2t_ref, b2_ref, o_ref, *,
                b_blk, matmul_dtype, precision):
    # coef_ref: (3, B) f32 SMEM      rows = [c_in, c_skip, c_out]
    # x_ref:    (B_BLK, C, N_TILE)   noisy input tile, lane axis = pixels
    # w1t_ref:  (HID, C)             resident first-layer weights (transposed)
    # film_ref: (B_BLK, HID, 1)      per-sample FiLM column b1+bemb+c_noise*wemb
    #                                (re-DMA'd only when the batch block changes)
    # w2t_ref:  (C, HID)             resident second-layer weights (transposed)
    # b2_ref:   (C, 1)               resident second-layer bias column
    # o_ref:    (B_BLK, C, N_TILE)   D_x output tile (f32)
    nb = pl.program_id(0)

    w1t = w1t_ref[...]
    w2t = w2t_ref[...]
    b2 = b2_ref[...]

    # Static unroll over the samples of this batch block (B_BLK is small);
    # amortizes the fixed per-grid-step overhead across several samples.
    for bl in range(b_blk):
        b = nb * b_blk + bl
        c_in = coef_ref[0, b]
        c_skip = coef_ref[1, b]
        c_out = coef_ref[2, b]

        x = x_ref[bl]                                        # (C, N_TILE) f32
        x_in = (c_in * x).astype(matmul_dtype)

        # --- inner network F_x: per-pixel MLP, channels-first / lane-dense --
        h = jnp.dot(w1t, x_in, preferred_element_type=jnp.float32,
                    precision=precision)                     # (HID, N_TILE)
        h = h + film_ref[bl]                                 # (HID, 1) bcast
        # Exact SiLU: kernel is HBM-bound, so the EUP exp + exact divide are
        # free filler work (no approx reciprocal -> f32-accurate result).
        h = h * (1.0 / (1.0 + jnp.exp(-h)))
        f = jnp.dot(w2t, h.astype(matmul_dtype),
                    preferred_element_type=jnp.float32,
                    precision=precision)                     # (C, N_TILE)
        f = f + b2

        # --- EDM skip combination (kept in f32) ------------------------------
        o_ref[bl] = c_skip * x + c_out * f


def _pick_tiles(B, C, N, *, lane_target=2048, step_elems_target=1 << 20,
                b_blk_max=8):
    """Choose (B_BLK, N_TILE).

    N_TILE: lane-dense pixel tile — a multiple of 128 near `lane_target` that
    divides N (the big lever for an HBM-bound kernel), or N itself when N is
    small / not 128-aligned.
    B_BLK: samples folded into one grid step to amortize per-step overhead,
    capped so the unroll stays short and the per-step f32 block stays <= ~4 MiB
    (=> double-buffered in+out <= ~16 MiB, safe within v7x's 64 MiB VMEM/TC).
    """
    if N <= lane_target or N % 128 != 0:
        # TODO(synk): very large, non-128-aligned N would need ragged tiling;
        # not needed for the spec's spatial sizes.
        n_tile = N
    else:
        n_tile = 128
        for mult in range(lane_target // 128, 0, -1):
            cand = mult * 128
            if N % cand == 0:
                n_tile = cand
                break
    per_sample = C * n_tile
    b_blk = max(1, min(B, b_blk_max, step_elems_target // max(per_sample, 1)))
    while B % b_blk != 0:
        b_blk -= 1
    return b_blk, n_tile


def edm_precond_forward(x_nchw, sigma, params, *, matmul_dtype=jnp.float32):
    """x_nchw: (B, C, H, W) float32, sigma: (B,) float32.

    matmul_dtype=jnp.bfloat16 is recommended on v6e/v7x for realistic C/HID
    (2x MXU throughput, half the weight/activation bytes); f32 is the default
    because the toy shapes are overhead-bound and the self-test checks
    exact-f32 accuracy.
    """
    w1, b1, wemb, bemb, w2, b2 = params
    B, C, H, W = x_nchw.shape
    N = H * W
    HID = w1.shape[1]

    x = x_nchw.astype(jnp.float32)
    s = sigma.astype(jnp.float32).reshape(B)

    # --- EDM coefficients, computed once per sample in the wrapper ----------
    sd2 = jnp.float32(SIGMA_DATA * SIGMA_DATA)
    s2 = s * s
    c_skip = sd2 / (s2 + sd2)                                # (B,)
    c_out = s * SIGMA_DATA / jnp.sqrt(s2 + sd2)              # (B,)
    c_in = 1.0 / jnp.sqrt(sd2 + s2)                          # (B,)
    c_noise = jnp.log(s) / 4.0                               # (B,)
    # (3, B): long axis last so SMEM padding is a single (8, 128)-word tile.
    coef = jnp.stack([c_in, c_skip, c_out], axis=0)          # (3, B) -> SMEM

    # Pre-fold the FiLM bias (b1 + bemb + c_noise * wemb) per sample, stored
    # as a (B, HID, 1) column so it broadcasts over the lane (pixel) axis
    # in-kernel with no relayout.
    film = (b1 + bemb) + c_noise[:, None] * wemb             # (B, HID)
    film = film[:, :, None].astype(jnp.float32)              # (B, HID, 1)

    # Channel-mixing weights transposed for the channels-first (C, N) layout.
    # TODO(synk): for large C/HID, keep the weight lane dim >= 128 (pad C or
    # use dot_general on untransposed weights) to avoid masked weight loads.
    w1t = jnp.transpose(w1).astype(matmul_dtype)             # (HID, C)
    w2t = jnp.transpose(w2).astype(matmul_dtype)             # (C, HID)
    b2c = jnp.transpose(b2).astype(jnp.float32)              # (C, 1)

    # NCHW is already contiguous as (B, C, N): free reshape, lane dim = pixels.
    x_bcn = x.reshape(B, C, N)

    b_blk, n_tile = _pick_tiles(B, C, N)
    grid = (B // b_blk, N // n_tile)

    # VMEM budget: double-buffered in+out blocks plus resident weights/film,
    # with 2x headroom; clamped to [32, 48] MiB which is safe on every
    # generation (v7x has 64 MiB/TC physical; v5e's default scoped limit is
    # only 16 MiB so we set it explicitly).
    step_bytes = b_blk * C * n_tile * 4
    pipeline_bytes = 2 * (step_bytes + step_bytes)           # 2x-buffered in+out
    vmem_limit = int(min(max(2 * pipeline_bytes + (8 << 20), 32 << 20),
                         48 << 20))

    precision = (jax.lax.Precision.HIGHEST
                 if jnp.dtype(matmul_dtype) == jnp.dtype(jnp.float32)
                 else jax.lax.Precision.DEFAULT)

    kernel = functools.partial(_edm_kernel, b_blk=b_blk,
                               matmul_dtype=matmul_dtype, precision=precision)

    cost = pl.CostEstimate(
        flops=4 * B * N * C * HID,
        transcendentals=B * N * HID,
        bytes_accessed=4 * (2 * B * C * N + 2 * C * HID + B * HID + C + 3 * B),
    )

    grid_spec = pltpu.PrefetchScalarGridSpec(
        num_scalar_prefetch=0,
        grid=grid,
        in_specs=[
            pl.BlockSpec(memory_space=pltpu.MemorySpace.SMEM),   # coef (3, B)
            pl.BlockSpec((b_blk, C, n_tile), lambda nb, nn: (nb, 0, nn)),  # x
            pl.BlockSpec((HID, C), lambda nb, nn: (0, 0)),       # w1^T resident
            pl.BlockSpec((b_blk, HID, 1), lambda nb, nn: (nb, 0, 0)),  # film
            pl.BlockSpec((C, HID), lambda nb, nn: (0, 0)),       # w2^T resident
            pl.BlockSpec((C, 1), lambda nb, nn: (0, 0)),         # b2 resident
        ],
        out_specs=pl.BlockSpec((b_blk, C, n_tile), lambda nb, nn: (nb, 0, nn)),
    )

    out_bcn = pl.pallas_call(
        kernel,
        out_shape=jax.ShapeDtypeStruct((B, C, N), jnp.float32),
        grid_spec=grid_spec,
        compiler_params=pltpu.CompilerParams(
            dimension_semantics=("parallel", "parallel"),
            vmem_limit_bytes=vmem_limit),
        cost_estimate=cost,
    )(coef, x_bcn, w1t, film, w2t, b2c)

    # (B, C, N) -> NCHW: free reshape.
    return out_bcn.reshape(B, C, H, W)


def _reference_forward(x_nchw, sigma, params):
    """Pure-JAX reference mirroring the PyTorch semantics (true f32 matmuls)."""
    w1, b1, wemb, bemb, w2, b2 = params
    x = x_nchw.astype(jnp.float32)
    s = sigma.astype(jnp.float32).reshape(-1, 1, 1, 1)
    sd2 = SIGMA_DATA ** 2
    c_skip = sd2 / (s ** 2 + sd2)
    c_out = s * SIGMA_DATA / jnp.sqrt(s ** 2 + sd2)
    c_in = 1.0 / jnp.sqrt(sd2 + s ** 2)
    c_noise = jnp.log(s) / 4.0                               # (B,1,1,1)

    B, C, H, W = x.shape
    hp = jax.lax.Precision.HIGHEST
    x_bnc = jnp.transpose(c_in * x, (0, 2, 3, 1)).reshape(B, H * W, C)
    h = jnp.einsum('bnc,ch->bnh', x_bnc, w1, precision=hp) + b1[None]
    h = h + c_noise.reshape(B, 1, 1) * wemb[None] + bemb[None]
    h = h * jax.nn.sigmoid(h)
    f = jnp.einsum('bnh,hc->bnc', h, w2, precision=hp) + b2[None]
    f_nchw = jnp.transpose(f.reshape(B, H, W, C), (0, 3, 1, 2))
    return c_skip * x + c_out * f_nchw


def make_params(key, channels, hidden):
    ks = jax.random.split(key, 6)
    w1 = jax.random.normal(ks[0], (channels, hidden), jnp.float32) * 0.2
    b1 = jax.random.normal(ks[1], (1, hidden), jnp.float32) * 0.05
    wemb = jax.random.normal(ks[2], (1, hidden), jnp.float32) * 0.1
    bemb = jax.random.normal(ks[3], (1, hidden), jnp.float32) * 0.05
    w2 = jax.random.normal(ks[4], (hidden, channels), jnp.float32) * 0.2
    b2 = jax.random.normal(ks[5], (1, channels), jnp.float32) * 0.05
    return (w1, b1, wemb, bemb, w2, b2)


if __name__ == "__main__":
    key = jax.random.PRNGKey(0)
    kx, ksig, kp = jax.random.split(key, 3)

    B, C, H, W = 2, 4, 16, 16
    HIDDEN = 32

    x = jax.random.normal(kx, (B, C, H, W), jnp.float32)
    # positive sigmas (log is taken)
    sigma = jnp.exp(jax.random.normal(ksig, (B,), jnp.float32) * 0.5)
    params = make_params(kp, C, HIDDEN)

    out = edm_precond_forward(x, sigma, params)
    out = jax.block_until_ready(out)

    ref = _reference_forward(x, sigma, params)
    assert out.shape == (B, C, H, W)
    # Exact sigmoid + HIGHEST-precision matmuls on both sides -> f32-level
    # agreement (tolerance tightened ~100x vs the previous approx-reciprocal
    # version).
    err = float(jnp.max(jnp.abs(out - ref)))
    assert jnp.allclose(out, ref, atol=1e-4, rtol=1e-4), err

    print("KERNEL_OK")
</pallas_src>

<mosaic_0001>
module attributes {stable_mosaic.version = 11 : i64} {
  func.func @_edm_kernel(%arg0: i32, %arg1: i32, %arg2: memref<3x2xf32, #tpu.memory_space<smem>>, %arg3: memref<2x4x256xf32, #tpu.memory_space<vmem>>, %arg4: memref<32x4xf32, #tpu.memory_space<vmem>>, %arg5: memref<2x32x1xf32, #tpu.memory_space<vmem>>, %arg6: memref<4x32xf32, #tpu.memory_space<vmem>>, %arg7: memref<4x1xf32, #tpu.memory_space<vmem>>, %arg8: memref<2x4x256xf32, #tpu.memory_space<vmem>>) attributes {dimension_semantics = [#tpu.dimension_semantics<parallel>, #tpu.dimension_semantics<parallel>], iteration_bounds = array<i64: 1, 1>, scalar_prefetch = 0 : i64, scratch_operands = 0 : i64, tpu.core_type = #tpu.core_type<tc>, window_params = [{transform_indices = @transform_0, window_bounds = array<i64: 3, 2>}, {transform_indices = @transform_1, window_bounds = array<i64: 2, 4, 256>}, {pipeline_mode = #tpu.pipeline_mode<synchronous>, transform_indices = @transform_2, window_bounds = array<i64: 32, 4>}, {transform_indices = @transform_3, window_bounds = array<i64: 2, 32, 1>}, {pipeline_mode = #tpu.pipeline_mode<synchronous>, transform_indices = @transform_4, window_bounds = array<i64: 4, 32>}, {pipeline_mode = #tpu.pipeline_mode<synchronous>, transform_indices = @transform_5, window_bounds = array<i64: 4, 1>}, {transform_indices = @transform_6, window_bounds = array<i64: 2, 4, 256>}]} {
    %c0 = arith.constant 0 : index
    %c0_0 = arith.constant 0 : index
    %0 = vector.load %arg4[%c0, %c0_0] : memref<32x4xf32, #tpu.memory_space<vmem>>, vector<32x4xf32>
    %c0_1 = arith.constant 0 : index
    %c0_2 = arith.constant 0 : index
    %1 = vector.load %arg6[%c0_1, %c0_2] : memref<4x32xf32, #tpu.memory_space<vmem>>, vector<4x32xf32>
    %c0_3 = arith.constant 0 : index
    %c0_4 = arith.constant 0 : index
    %2 = vector.load %arg7[%c0_3, %c0_4] : memref<4x1xf32, #tpu.memory_space<vmem>>, vector<4x1xf32>
    %c2_i32 = arith.constant 2 : i32
    %3 = arith.muli %arg0, %c2_i32 : i32
    %c0_i32 = arith.constant 0 : i32
    %4 = arith.addi %3, %c0_i32 : i32
    %c0_5 = arith.constant 0 : index
    %5 = arith.index_cast %4 : i32 to index
    %6 = memref.load %arg2[%c0_5, %5] : memref<3x2xf32, #tpu.memory_space<smem>>
    %c1 = arith.constant 1 : index
    %7 = arith.index_cast %4 : i32 to index
    %8 = memref.load %arg2[%c1, %7] : memref<3x2xf32, #tpu.memory_space<smem>>
    %c2 = arith.constant 2 : index
    %9 = arith.index_cast %4 : i32 to index
    %10 = memref.load %arg2[%c2, %9] : memref<3x2xf32, #tpu.memory_space<smem>>
    %c0_6 = arith.constant 0 : index
    %c0_7 = arith.constant 0 : index
    %c0_8 = arith.constant 0 : index
    %11 = vector.load %arg3[%c0_6, %c0_7, %c0_8] : memref<2x4x256xf32, #tpu.memory_space<vmem>>, vector<1x4x256xf32>
    %12 = vector.shape_cast %11 : vector<1x4x256xf32> to vector<4x256xf32>
    %13 = vector.broadcast %6 : f32 to vector<4x256xf32>
    %14 = arith.mulf %13, %12 : vector<4x256xf32>
    %cst = arith.constant dense<0.000000e+00> : vector<32x256xf32>
    %15 = tpu.matmul %0, %14, %cst {dimension_numbers = #tpu.dot_dimension_numbers<[1], [0], [0], [1], [0, 0, 1, 1], [], []>, precision = #tpu.contract_precision<fp32>} : vector<32x4xf32>, vector<4x256xf32>, vector<32x256xf32> -> vector<32x256xf32>
    %c0_9 = arith.constant 0 : index
    %c0_10 = arith.constant 0 : index
    %c0_11 = arith.constant 0 : index
    %16 = vector.load %arg5[%c0_9, %c0_10, %c0_11] : memref<2x32x1xf32, #tpu.memory_space<vmem>>, vector<1x32x1xf32>
    %17 = vector.shape_cast %16 : vector<1x32x1xf32> to vector<32x1xf32>
    %18 = vector.broadcast %17 : vector<32x1xf32> to vector<32x256xf32>
    %19 = arith.addf %15, %18 : vector<32x256xf32>
    %cst_12 = arith.constant 0.000000e+00 : f32
    %20 = vector.broadcast %cst_12 : f32 to vector<32x256xf32>
    %21 = arith.subf %20, %19 : vector<32x256xf32>
    %22 = math.exp %21 : vector<32x256xf32>
    %cst_13 = arith.constant 1.000000e+00 : f32
    %23 = vector.broadcast %cst_13 : f32 to vector<32x256xf32>
    %24 = arith.addf %23, %22 : vector<32x256xf32>
    %cst_14 = arith.constant 1.000000e+00 : f32
    %25 = vector.broadcast %cst_14 : f32 to vector<32x256xf32>
    %26 = arith.divf %25, %24 : vector<32x256xf32>
    %27 = arith.mulf %19, %26 : vector<32x256xf32>
    %cst_15 = arith.constant dense<0.000000e+00> : vector<4x256xf32>
    %28 = tpu.matmul %1, %27, %cst_15 {dimension_numbers = #tpu.dot_dimension_numbers<[1], [0], [0], [1], [0, 0, 1, 1], [], []>, precision = #tpu.contract_precision<fp32>} : vector<4x32xf32>, vector<32x256xf32>, vector<4x256xf32> -> vector<4x256xf32>
    %29 = vector.broadcast %2 : vector<4x1xf32> to vector<4x256xf32>
    %30 = arith.addf %28, %29 : vector<4x256xf32>
    %31 = vector.broadcast %8 : f32 to vector<4x256xf32>
    %32 = arith.mulf %31, %12 : vector<4x256xf32>
    %33 = vector.broadcast %10 : f32 to vector<4x256xf32>
    %34 = arith.mulf %33, %30 : vector<4x256xf32>
    %35 = arith.addf %32, %34 : vector<4x256xf32>
    %c0_16 = arith.constant 0 : index
    %c0_17 = arith.constant 0 : index
    %c0_18 = arith.constant 0 : index
    %36 = vector.load %arg8[%c0_16, %c0_17, %c0_18] : memref<2x4x256xf32, #tpu.memory_space<vmem>>, vector<1x4x256xf32>
    %37 = vector.shape_cast %36 : vector<1x4x256xf32> to vector<4x256xf32>
    %38 = vector.shape_cast %35 : vector<4x256xf32> to vector<1x4x256xf32>
    tpu.vector_store %arg8[%c0_16, %c0_17, %c0_18], %38 {strides = array<i32>} : memref<2x4x256xf32, #tpu.memory_space<vmem>>, vector<1x4x256xf32>,
    %c2_i32_19 = arith.constant 2 : i32
    %39 = arith.muli %arg0, %c2_i32_19 : i32
    %c1_i32 = arith.constant 1 : i32
    %40 = arith.addi %39, %c1_i32 : i32
    %c0_20 = arith.constant 0 : index
    %41 = arith.index_cast %40 : i32 to index
    %42 = memref.load %arg2[%c0_20, %41] : memref<3x2xf32, #tpu.memory_space<smem>>
    %c1_21 = arith.constant 1 : index
    %43 = arith.index_cast %40 : i32 to index
    %44 = memref.load %arg2[%c1_21, %43] : memref<3x2xf32, #tpu.memory_space<smem>>
    %c2_22 = arith.constant 2 : index
    %45 = arith.index_cast %40 : i32 to index
    %46 = memref.load %arg2[%c2_22, %45] : memref<3x2xf32, #tpu.memory_space<smem>>
    %c1_23 = arith.constant 1 : index
    %c0_24 = arith.constant 0 : index
    %c0_25 = arith.constant 0 : index
    %47 = vector.load %arg3[%c1_23, %c0_24, %c0_25] : memref<2x4x256xf32, #tpu.memory_space<vmem>>, vector<1x4x256xf32>
    %48 = vector.shape_cast %47 : vector<1x4x256xf32> to vector<4x256xf32>
    %49 = vector.broadcast %42 : f32 to vector<4x256xf32>
    %50 = arith.mulf %49, %48 : vector<4x256xf32>
    %cst_26 = arith.constant dense<0.000000e+00> : vector<32x256xf32>
    %51 = tpu.matmul %0, %50, %cst_26 {dimension_numbers = #tpu.dot_dimension_numbers<[1], [0], [0], [1], [0, 0, 1, 1], [], []>, precision = #tpu.contract_precision<fp32>} : vector<32x4xf32>, vector<4x256xf32>, vector<32x256xf32> -> vector<32x256xf32>
    %c1_27 = arith.constant 1 : index
    %c0_28 = arith.constant 0 : index
    %c0_29 = arith.constant 0 : index
    %52 = vector.load %arg5[%c1_27, %c0_28, %c0_29] : memref<2x32x1xf32, #tpu.memory_space<vmem>>, vector<1x32x1xf32>
    %53 = vector.shape_cast %52 : vector<1x32x1xf32> to vector<32x1xf32>
    %54 = vector.broadcast %53 : vector<32x1xf32> to vector<32x256xf32>
    %55 = arith.addf %51, %54 : vector<32x256xf32>
    %cst_30 = arith.constant 0.000000e+00 : f32
    %56 = vector.broadcast %cst_30 : f32 to vector<32x256xf32>
    %57 = arith.subf %56, %55 : vector<32x256xf32>
    %58 = math.exp %57 : vector<32x256xf32>
    %cst_31 = arith.constant 1.000000e+00 : f32
    %59 = vector.broadcast %cst_31 : f32 to vector<32x256xf32>
    %60 = arith.addf %59, %58 : vector<32x256xf32>
    %cst_32 = arith.constant 1.000000e+00 : f32
    %61 = vector.broadcast %cst_32 : f32 to vector<32x256xf32>
    %62 = arith.divf %61, %60 : vector<32x256xf32>
    %63 = arith.mulf %55, %62 : vector<32x256xf32>
    %cst_33 = arith.constant dense<0.000000e+00> : vector<4x256xf32>
    %64 = tpu.matmul %1, %63, %cst_33 {dimension_numbers = #tpu.dot_dimension_numbers<[1], [0], [0], [1], [0, 0, 1, 1], [], []>, precision = #tpu.contract_precision<fp32>} : vector<4x32xf32>, vector<32x256xf32>, vector<4x256xf32> -> vector<4x256xf32>
    %65 = vector.broadcast %2 : vector<4x1xf32> to vector<4x256xf32>
    %66 = arith.addf %64, %65 : vector<4x256xf32>
    %67 = vector.broadcast %44 : f32 to vector<4x256xf32>
    %68 = arith.mulf %67, %48 : vector<4x256xf32>
    %69 = vector.broadcast %46 : f32 to vector<4x256xf32>
    %70 = arith.mulf %69, %66 : vector<4x256xf32>
    %71 = arith.addf %68, %70 : vector<4x256xf32>
    %c1_34 = arith.constant 1 : index
    %c0_35 = arith.constant 0 : index
    %c0_36 = arith.constant 0 : index
    %72 = vector.load %arg8[%c1_34, %c0_35, %c0_36] : memref<2x4x256xf32, #tpu.memory_space<vmem>>, vector<1x4x256xf32>
    %73 = vector.shape_cast %72 : vector<1x4x256xf32> to vector<4x256xf32>
    %74 = vector.shape_cast %71 : vector<4x256xf32> to vector<1x4x256xf32>
    tpu.vector_store %arg8[%c1_34, %c0_35, %c0_36], %74 {strides = array<i32>} : memref<2x4x256xf32, #tpu.memory_space<vmem>>, vector<1x4x256xf32>,
    return
  }
  func.func @transform_0(%arg0: i32, %arg1: i32) -> (i32, i32) {
    %c0_i32 = arith.constant 0 : i32
    %c0_i32_0 = arith.constant 0 : i32
    %c0_i32_1 = arith.constant 0 : i32
    return %c0_i32, %c0_i32_0 : i32, i32
  }
  func.func @transform_1(%arg0: i32, %arg1: i32) -> (i32, i32, i32) {
    %c0_i32 = arith.constant 0 : i32
    %c0_i32_0 = arith.constant 0 : i32
    return %arg0, %c0_i32, %arg1 : i32, i32, i32
  }
  func.func @transform_2(%arg0: i32, %arg1: i32) -> (i32, i32) {
    %c0_i32 = arith.constant 0 : i32
    %c0_i32_0 = arith.constant 0 : i32
    %c0_i32_1 = arith.constant 0 : i32
    return %c0_i32, %c0_i32_0 : i32, i32
  }
  func.func @transform_3(%arg0: i32, %arg1: i32) -> (i32, i32, i32) {
    %c0_i32 = arith.constant 0 : i32
    %c0_i32_0 = arith.constant 0 : i32
    %c0_i32_1 = arith.constant 0 : i32
    return %arg0, %c0_i32, %c0_i32_0 : i32, i32, i32
  }
  func.func @transform_4(%arg0: i32, %arg1: i32) -> (i32, i32) {
    %c0_i32 = arith.constant 0 : i32
    %c0_i32_0 = arith.constant 0 : i32
    %c0_i32_1 = arith.constant 0 : i32
    return %c0_i32, %c0_i32_0 : i32, i32
  }
  func.func @transform_5(%arg0: i32, %arg1: i32) -> (i32, i32) {
    %c0_i32 = arith.constant 0 : i32
    %c0_i32_0 = arith.constant 0 : i32
    %c0_i32_1 = arith.constant 0 : i32
    return %c0_i32, %c0_i32_0 : i32, i32
  }
  func.func @transform_6(%arg0: i32, %arg1: i32) -> (i32, i32, i32) {
    %c0_i32 = arith.constant 0 : i32
    %c0_i32_0 = arith.constant 0 : i32
    return %arg0, %c0_i32, %arg1 : i32, i32, i32
  }
}

</mosaic_0001>

<bundles_post_ra>
// kernel: tpu_custom_call.1
= control target key start
LH: loop header
LB: loop body
LE: loop exit
PB: predicated region body
PF: predicated region fallthrough
CT: control target
= control target key end

     0   :  { %11 = vsyncpa [#allocation4], 0  ;;  %s3275_s0 = inlined_call_operand.vmem [shape: f32[3,2], index: 0, kind: input, shape index: {}]   ;;  %s3276_s1 = inlined_call_operand.vmem [shape: f32[2,4,256], index: 1, kind: input, shape index: {}]   ;;  %s3277_s2 = inlined_call_operand.vmem [shape: f32[32,4], index: 2, kind: input, shape index: {}]   ;;  %s3278_s3 = inlined_call_operand.vmem [shape: f32[2,32,1], index: 3, kind: input, shape index: {}]   ;;  %s3279_s4 = inlined_call_operand.vmem [shape: f32[4,32], index: 4, kind: input, shape index: {}]   ;;  %s3280_s5 = inlined_call_operand.vmem [shape: f32[4,1], index: 5, kind: input, shape index: {}]   ;;  %s3281_s6 = inlined_call_operand.hbm [shape: f32[2,4,256], index: 6, kind: output, shape index: {}]  }
   0x1   :  { %12 = vsyncpa [#allocation3], 0  ;;  %s19_s23 = sshll.u32 %s3275_s0, 4  ;;  %s20_s23 = int_to_ptr.vmem [resolvable:$true] %s19_s23 }
   0x2   :  { %s2706_s24 = scalar_lea.vmem %s20_s23, 64  ;;  %p2711_p1 = scmp.lt.s32.totalorder %s20_s23, %s20_s23 }
   0x3   :  { %p2707_p0 = scmp.ne.s32.totalorder %s20_s23, %s2706_s24  ;;  %p2712_p2 = scmp.lt.s32.totalorder %s2706_s24, %s2706_s24 }
   0x5   :  { %p2713_p3 = por %p2712_p2, %p2711_p1 }
   0x7   :  { %p2714_p4 = pnand %p2713_p3, %p2707_p0 }
   0x9   :  { %2717 = shalt.err (!%p2714_p4)
}
   0xa   :  { %s2742_s25 = smov [#allocation2]  }
   0xb   :  { %22 = dma.vmem_to_smem %s20_s23, 64, %s2742_s25, [#allocation4]  }
   0xc   :  { %2738 = dma.done.wait [#allocation4], 64  }
   0xd   :  { %2739 = vsyncadd [#allocation4], 4294967232 }
   0xe   :  { %36 = sfence }
   0xf   :  { %s44_s26 = sld [smem:[#allocation2]]  ;;  %v37_v0 = vld [vmem:[%s3277_s2] sm:$0xff]  ;;  %v3282_v1 = vmov 0.0   ;;  %vm86_vm0 = vcmask 31744   ;;  %v38_v2 = vld [vmem:[%s3277_s2 + $0x8] sm:$0xff]  ;;  %v39_v3 = vld [vmem:[%s3277_s2 + $0x10] sm:$0xff] }
  0x10   :  { %170 = vmatprep.mubr.f32.mxu0 %v3282_v1  ;;  %289 = vmatprep.mubr.f32.mxu1 %v3282_v1  ;;  %v40_v4 = vld [vmem:[%s3277_s2 + $0x18] sm:$0xff]  ;;  %v88_v5 = vsel %vm86_vm0, %v37_v0, 0  ;;  %v91_v6 = vsel %vm86_vm0, %v38_v2, 0  ;;  %v94_v7 = vsel %vm86_vm0, %v39_v3, 0  ;;  %v2744_v8 = vmov 0   ;;  %v61_v9 = vld [vmem:[%s3278_s3 + $0x8] sm:$0xff] }
  0x11   :  { %2641 = vset.pattern.permute.xlu1 %v2744_v8  ;;  %2640 = vset.pattern.permute.xlu0 %v2744_v8  ;;  %v2806_v10 = vand.u32 4294901760, %v88_v5  ;;  %v2808_v11 = vand.u32 4294901760, %v91_v6  ;;  %v2810_v12 = vand.u32 4294901760, %v94_v7  ;;  %v63_v13 = vld [vmem:[%s3278_s3 + $0x18] sm:$0xff]  ;;  %v2818_v14 = vld [vmem:[%s3276_s1] sm:$0xff]  ;;  %v97_v15 = vsel %vm86_vm0, %v40_v4, 0 }
  0x12   :  { %71 = vperm.xlu1 %2641, %v61_v9   ;;  %3291 = vst [vmem:[#allocation8_spill] sm:$0xff] %v2818_v14  ;;  %v60_v16 = vld [vmem:[%s3278_s3] sm:$0xff]  ;;  %81 = vperm.xlu0 %2640, %v63_v13   ;;  %v62_v19 = vld [vmem:[%s3278_s3 + $0x10] sm:$0xff]  ;;  %vm99_vm1 = vcmask 1043456   ;;  %v2840_v24 = vand.u32 4294901760, %v97_v15  ;;  %v2633_v30 = vld [vmem:[%s3278_s3 + $0x38] sm:$0xff] }
  0x13   :  { %v2825_v17 = vsub.f32 %v88_v5, %v2806_v10  ;;  %v2828_v18 = vsub.f32 %v91_v6, %v2808_v11  ;;  %v2838_v23 = vsub.f32 %v94_v7, %v2810_v12  ;;  %v2632_v26 = vld [vmem:[%s3278_s3 + $0x30] sm:$0xff]  ;;  %v2630_v39 = vld [vmem:[%s3278_s3 + $0x20] sm:$0xff]  ;;  %v2631_v43 = vld [vmem:[%s3278_s3 + $0x28] sm:$0xff]  ;;  %vm777_vm2 = vcmask 261120   ;;  %s2624_s30 = sld [smem:[#allocation2 + $0x80]]  ;;  %s2745_s9 = smov [#allocation5]  }
  0x14   :  { %v2861_v34 = vsub.f32 %v97_v15, %v2840_v24  ;;  %v42_v50 = vld [vmem:[%s3280_s5] sm:$0xf]  ;;  %s2628_s7 = sld [smem:[#allocation2 + $0x101]]  ;;  %s2612_s10 = sshll.u32 %s2745_s9, 4  ;;  %s2613_s10 = int_to_ptr.vmem [resolvable:$true] %s2612_s10 }
  0x15   :  { %v58_v20 = vstv %s44_s26  ;;  %v2835_v22 = vand.u32 4294901760, %v2825_v17  ;;  %3293 = vst [vmem:[#allocation10_spill] sm:$0xff] %v2838_v23  ;;  %v2843_v25 = vand.u32 4294901760, %v2828_v18  ;;  %v2858_v33 = vand.u32 4294901760, %v2838_v23  ;;  %s2627_s8 = sld [smem:[#allocation2 + $0x81]]  ;;  %s2718_s11 = scalar_lea.vmem %s2613_s10, 256 }
  0x16   :  { %v59_v21 = vmul.f32 %v58_v20, %v2818_v14  ;;  %66 = vperm.xlu1 %2641, %v60_v16   ;;  %76 = vperm.xlu0 %2640, %v62_v19   ;;  %3296 = vst [vmem:[#allocation13_spill] sm:$0xff] %v2861_v34  ;;  %v2873_v42 = vand.u32 4294901760, %v2861_v34  ;;  %p2719_p5 = scmp.ne.s32.totalorder %s2613_s10, %s2718_s11  ;;  %p2723_p6 = scmp.lt.s32.totalorder %s2613_s10, %s2613_s10 }
  0x17   :  { %3292 = vst [vmem:[#allocation9_spill] sm:$0xff] %v2835_v22  ;;  %3294 = vst [vmem:[#allocation11_spill] sm:$0xff] %v2843_v25  ;;  %v174_v29 = vsub.f32 %v2825_v17, %v2835_v22  ;;  %v185_v37 = vsub.f32 %v2828_v18, %v2843_v25  ;;  %v196_v47 = vsub.f32 %v2838_v23, %v2858_v33  ;;  %p2724_p7 = scmp.lt.s32.totalorder %s2718_s11, %s2718_s11 }
  0x18   :  { %v85_v27 = vcombine.high %v59_v21, %v59_v21  ;;  %v100_v28 = vsel %vm99_vm1, %v59_v21, 0  ;;  %3295 = vst [vmem:[#allocation12_spill] sm:$0xff] %v2858_v33  ;;  %3297 = vst [vmem:[#allocation14_spill] sm:$0xff] %v2873_v42  ;;  %v207_v53 = vsub.f32 %v2861_v34, %v2873_v42 }
  0x19   :  { %v2854_v31 = vand.u32 4294901760, %v100_v28  ;;  %v2863_v36 = vand.u32 4294901760, %v174_v29  ;;  %v2879_v44 = vand.u32 4294901760, %v185_v37  ;;  %v2888_v52 = vand.u32 4294901760, %v196_v47  ;;  %p2725_p8 = por %p2724_p7, %p2723_p6 }
  0x1a   :  { %v102_v32 = vsel %vm99_vm1, %v85_v27, 0  ;;  %1370 = vperm.xlu1 %2641, %v2632_v26   ;;  %1375 = vperm.xlu0 %2640, %v2633_v30   ;;  %v2895_v54 = vand.u32 4294901760, %v207_v53 }
  0x1b   :  { %v134_v35 = vand.u32 4294901760, %v102_v32  ;;  %v252_v38 = vsub.f32 %v100_v28, %v2854_v31  ;;  %p2726_p9 = pnand %p2725_p8, %p2719_p5 }
  0x1d   :  { %135 = vmatprep.subr.mxu0 %v134_v35  ;;  %v246_v40 = vsub.f32 %v102_v32, %v134_v35  ;;  %v253_v41 = vand.u32 4294901760, %v252_v38 }
  0x1e   :  { %137 = vmatpush1.msra.mxu0 %v2854_v31  ;;  %1360 = vperm.xlu1 %2641, %v2630_v39  }
  0x1f   :  { %176 = vmatmul.mubr.f32.vlgmr.msra.gmra.mxu0 %v2863_v36  ;;  %v247_v45 = vand.u32 4294901760, %v246_v40  ;;  %v254_v46 = vsub.f32 %v252_v38, %v253_v41  ;;  %350 = vmatprep.subr.mxu0 %v246_v40 }
  0x20   :  { %181 = vmatprep.mubr.f32.mxu0 %v3282_v1  ;;  %353 = vmatpush1.msra.mxu0 %v252_v38 }
  0x21   :  { %v248_v48 = vsub.f32 %v246_v40, %v247_v45  ;;  %555 = vmatprep.subr.mxu0 %v247_v45  ;;  %1365 = vperm.xlu0 %2640, %v2631_v43   ;;  %v255_v49 = vand.u32 4294901760, %v254_v46 }
  0x23   :  { %187 = vmatmul.mubr.f32.gmra.mxu0 %v2879_v44  ;;  %v249_v51 = vand.u32 4294901760, %v248_v48 }
  0x24   :  { %192 = vmatprep.mubr.f32.mxu0 %v3282_v1 }
  0x25   :  { %250 = vmatprep.subr.mxu1 %v249_v51  ;;  %774 = vperm.xlu0 %2640, %v42_v50  }
  0x26   :  { %256 = vmatpush1.msra.mxu1 %v255_v49 }
  0x27   :  { %198 = vmatmul.mubr.f32.gmra.mxu0 %v2888_v52  ;;  %291 = vmatmul.mubr.f32.vlgmr.msra.gmra.mxu1 %v2806_v10 }
  0x28   :  { %203 = vmatprep.mubr.f32.mxu0 %v3282_v1  ;;  %296 = vmatprep.mubr.f32.mxu1 %v3282_v1 }
  0x29   :  { %450 = vmatprep.subr.mxu1 %v134_v35 }
  0x2a   :  { %452 = vmatpush1.msra.mxu1 %v2854_v31 }
  0x2b   :  { %209 = vmatmul.mubr.f32.gmra.mxu0 %v2895_v54  ;;  %298 = vmatmul.mubr.f32.gmra.mxu1 %v2808_v11 }
  0x2c   :  { %303 = vmatprep.mubr.f32.mxu1 %v3282_v1  ;;  %386 = vmatprep.mubr.f32.mxu0 %v3282_v1 }
  0x2d   :  { %652 = vmatprep.subr.mxu1 %v134_v35 }
  0x2f   :  { %305 = vmatmul.mubr.f32.gmra.mxu1 %v2810_v12  ;;  %389 = vmatmul.mubr.f32.vlgmr.msra.gmra.mxu0 %v2825_v17 }
  0x30   :  { %310 = vmatprep.mubr.f32.mxu1 %v3282_v1  ;;  %394 = vmatprep.mubr.f32.mxu0 %v3282_v1 }
  0x31   :  { %559 = vmatpush1.msra.mxu0 %v253_v41 }
  0x33   :  { %312 = vmatmul.mubr.f32.gmra.mxu1 %v2840_v24  ;;  %397 = vmatmul.mubr.f32.gmra.mxu0 %v2828_v18 }
  0x34   :  { %402 = vmatprep.mubr.f32.mxu0 %v3282_v1  ;;  %485 = vmatprep.mubr.f32.mxu1 %v3282_v1 }
  0x37   :  { %405 = vmatmul.mubr.f32.gmra.mxu0 %v2838_v23  ;;  %489 = vmatmul.mubr.f32.vlgmr.msra.gmra.mxu1 %v2835_v22 }
  0x38   :  { %410 = vmatprep.mubr.f32.mxu0 %v3282_v1  ;;  %494 = vmatprep.mubr.f32.mxu1 %v3282_v1 }
  0x39   :  { %654 = vmatpush1.msra.mxu1 %v2854_v31 }
  0x3b   :  { %413 = vmatmul.mubr.f32.gmra.mxu0 %v2861_v34  ;;  %498 = vmatmul.mubr.f32.gmra.mxu1 %v2843_v25 }
  0x3c   :  { %503 = vmatprep.mubr.f32.mxu1 %v3282_v1  ;;  %592 = vmatprep.mubr.f32.mxu0 %v3282_v1 }
  0x3f   :  { %507 = vmatmul.mubr.f32.gmra.mxu1 %v2858_v33  ;;  %594 = vmatmul.mubr.f32.vlgmr.msra.gmra.mxu0 %v2806_v10 }
  0x40   :  { %512 = vmatprep.mubr.f32.mxu1 %v3282_v1  ;;  %599 = vmatprep.mubr.f32.mxu0 %v3282_v1 }
  0x43   :  { %516 = vmatmul.mubr.f32.gmra.mxu1 %v2873_v42  ;;  %601 = vmatmul.mubr.f32.gmra.mxu0 %v2808_v11 }
  0x44   :  { %606 = vmatprep.mubr.f32.mxu0 %v3282_v1  ;;  %687 = vmatprep.mubr.f32.mxu1 %v3282_v1 }
  0x47   :  { %608 = vmatmul.mubr.f32.gmra.mxu0 %v2810_v12  ;;  %689 = vmatmul.mubr.f32.vlgmr.msra.gmra.mxu1 %v2806_v10 }
  0x48   :  { %613 = vmatprep.mubr.f32.mxu0 %v3282_v1  ;;  %694 = vmatprep.mubr.f32.mxu1 %v3282_v1 }
  0x4b   :  { %615 = vmatmul.mubr.f32.gmra.mxu0 %v2840_v24  ;;  %696 = vmatmul.mubr.f32.gmra.mxu1 %v2808_v11 }
  0x4c   :  { %701 = vmatprep.mubr.f32.mxu1 %v3282_v1  ;;  %853 = vmatprep.mubr.f32.mxu0 %v3282_v1 }
  0x4f   :  { %703 = vmatmul.mubr.f32.gmra.mxu1 %v2810_v12 }
  0x50   :  { %708 = vmatprep.mubr.f32.mxu1 %v3282_v1 }
  0x53   :  { %710 = vmatmul.mubr.f32.gmra.mxu1 %v2840_v24 }
  0x54   :  { %969 = vmatprep.mubr.f32.mxu1 %v3282_v1 }
  0x8d   :  { %v72_v8 = vpop.permute.xlu1 %71  ;;  %v82_v28 = vpop.permute.xlu0 %81 }
  0x91   :  { %v67_v21 = vpop.permute.xlu1 %66  ;;  %v77_v43 = vpop.permute.xlu0 %76 }
  0xdf   :  { %v177_v55 = vpop.f32.mrf.mxu0 }
  0xe0   :  { %v178_v31 = vadd.f32 %v177_v55, %v67_v21 }
  0xe1   :  { %v179_v56 = vpop.f32.mrf.mxu0 }
  0xe2   :  { %v180_v40 = vadd.f32 %v179_v56, %v67_v21 }
  0xe3   :  { %v188_v57 = vpop.f32.mrf.mxu0 }
  0xe4   :  { %v189_v39 = vadd.f32 %v188_v57, %v72_v8 }
  0xe5   :  { %v190_v58 = vpop.f32.mrf.mxu0 }
  0xe6   :  { %v191_v42 = vadd.f32 %v190_v58, %v72_v8 }
  0xe7   :  { %v199_v59 = vpop.f32.mrf.mxu0  ;;  %v292_v60 = vpop.f32.mrf.mxu1 }
  0xe8   :  { %v293_v41 = vadd.f32 %v292_v60, %v178_v31  ;;  %v200_v53 = vadd.f32 %v199_v59, %v77_v43 }
  0xe9   :  { %v201_v61 = vpop.f32.mrf.mxu0  ;;  %v294_v62 = vpop.f32.mrf.mxu1 }
  0xea   :  { %v295_v47 = vadd.f32 %v294_v62, %v180_v40  ;;  %v202_v56 = vadd.f32 %v201_v61, %v77_v43 }
  0xeb   :  { %v210_v63 = vpop.f32.mrf.mxu0  ;;  %v299_v0 = vpop.f32.mrf.mxu1 }
  0xec   :  { %v300_v51 = vadd.f32 %v299_v0, %v189_v39  ;;  %v211_v57 = vadd.f32 %v210_v63, %v82_v28 }
  0xed   :  { %v212_v2 = vpop.f32.mrf.mxu0  ;;  %v301_v3 = vpop.f32.mrf.mxu1 }
  0xee   :  { %v302_v60 = vadd.f32 %v301_v3, %v191_v42 }
  0xef   :  { %v306_v4 = vpop.f32.mrf.mxu1  ;;  %v390_v5 = vpop.f32.mrf.mxu0 }
  0xf0   :  { %v391_v48 = vadd.f32 %v390_v5, %v293_v41  ;;  %v307_v23 = vadd.f32 %v306_v4, %v200_v53 }
  0xf1   :  { %v308_v6 = vpop.f32.mrf.mxu1  ;;  %v392_v7 = vpop.f32.mrf.mxu0 }
  0xf2   :  { %v393_v1 = vadd.f32 %v392_v7, %v295_v47 }
  0xf3   :  { %v313_v9 = vpop.f32.mrf.mxu1  ;;  %v398_v13 = vpop.f32.mrf.mxu0 }
  0xf4   :  { %v399_v25 = vadd.f32 %v398_v13, %v300_v51 }
  0xf5   :  { %v315_v15 = vpop.f32.mrf.mxu1  ;;  %v400_v16 = vpop.f32.mrf.mxu0 }
  0xf6   :  { %v401_v0 = vadd.f32 %v400_v16, %v302_v60 }
  0xf7   :  { %v406_v19 = vpop.f32.mrf.mxu0  ;;  %v490_v20 = vpop.f32.mrf.mxu1 }
  0xf8   :  { %v491_v14 = vadd.f32 %v490_v20, %v391_v48  ;;  %v309_v20 = vadd.f32 %v308_v6, %v202_v56  ;;  %v407_v58 = vadd.f32 %v406_v19, %v307_v23 }
  0xf9   :  { %v408_v26 = vpop.f32.mrf.mxu0  ;;  %v492_v27 = vpop.f32.mrf.mxu1 }
  0xfa   :  { %v493_v34 = vadd.f32 %v492_v27, %v393_v1  ;;  %v213_v1 = vadd.f32 %v212_v2, %v82_v28  ;;  %v409_v3 = vadd.f32 %v408_v26, %v309_v20 }
  0xfb   :  { %v414_v29 = vpop.f32.mrf.mxu0  ;;  %v499_v30 = vpop.f32.mrf.mxu1 }
  0xfc   :  { %v500_v62 = vadd.f32 %v499_v30, %v399_v25 }
  0xfd   :  { %v416_v32 = vpop.f32.mrf.mxu0  ;;  %v501_v35 = vpop.f32.mrf.mxu1 }
  0xfe   :  { %v502_v63 = vadd.f32 %v501_v35, %v401_v0 }
  0xff   :  { %v508_v37 = vpop.f32.mrf.mxu1  ;;  %v595_v38 = vpop.f32.mrf.mxu0 }
 0x100   :  { %v596_v22 = vadd.f32 %v595_v38, %v491_v14  ;;  %v314_v14 = vadd.f32 %v313_v9, %v211_v57  ;;  %v509_v4 = vadd.f32 %v508_v37, %v407_v58 }
 0x101   :  { %v510_v45 = vpop.f32.mrf.mxu1  ;;  %v597_v46 = vpop.f32.mrf.mxu0 }
 0x102   :  { %v598_v5 = vadd.f32 %v597_v46, %v493_v34  ;;  %v316_v34 = vadd.f32 %v315_v15, %v213_v1  ;;  %v415_v13 = vadd.f32 %v414_v29, %v314_v14  ;;  %v511_v19 = vadd.f32 %v510_v45, %v409_v3 }
 0x103   :  { %v517_v49 = vpop.f32.mrf.mxu1  ;;  %v602_v50 = vpop.f32.mrf.mxu0 }
 0x104   :  { %v603_v8 = vadd.f32 %v602_v50, %v500_v62  ;;  %v417_v9 = vadd.f32 %v416_v32, %v316_v34  ;;  %v518_v28 = vadd.f32 %v517_v49, %v415_v13 }
 0x105   :  { %v519_v55 = vpop.f32.mrf.mxu1  ;;  %v604_v33 = vpop.f32.mrf.mxu0 }
 0x106   :  { %v605_v16 = vadd.f32 %v604_v33, %v502_v63  ;;  %v520_v15 = vadd.f32 %v519_v55, %v417_v9 }
 0x107   :  { %v609_v21 = vpop.f32.mrf.mxu0  ;;  %v690_v31 = vpop.f32.mrf.mxu1 }
 0x108   :  { %v2941_v40 = vadd.f32 %v690_v31, %v596_v22  ;;  %v610_v27 = vadd.f32 %v609_v21, %v509_v4 }
 0x109   :  { %v611_v59 = vpop.f32.mrf.mxu0  ;;  %v692_v7 = vpop.f32.mrf.mxu1 }
 0x10a   :  { %v2943_v39 = vadd.f32 %v692_v7, %v598_v5  ;;  %v716_v42 = vsub.f32 0.0, %v2941_v40  ;;  %v612_v37 = vadd.f32 %v611_v59, %v511_v19 }
 0x10b   :  { %v697_v61 = vpop.f32.mrf.mxu1  ;;  %v616_v6 = vpop.f32.mrf.mxu0 }
 0x10c   :  { %v717_v25 = vsub.f32 0.0, %v2943_v39  ;;  %v2947_v22 = vadd.f32 %v697_v61, %v603_v8  ;;  %v724_v35 = vmul.f32 1.442695, %v716_v42  ;;  %v617_v45 = vadd.f32 %v616_v6, %v518_v28 }
 0x10d   :  { %v699_v23 = vpop.f32.mrf.mxu1  ;;  %v618_v29 = vpop.f32.mrf.mxu0 }
 0x10e   :  { %v726_v30 = vmul.f32 1.442695, %v717_v25  ;;  %v718_v2 = vsub.f32 0.0, %v2947_v22  ;;  %v2950_v38 = vadd.f32 %v699_v23, %v605_v16  ;;  %v619_v50 = vadd.f32 %v618_v29, %v520_v15  ;;  %v41_v16 = vld [vmem:[%s3279_s4] sm:$0xf]  ;;  %s2971_s4 = sld [smem:[#allocation2 + $0x1]] }
 0x10f   :  { %v704_v26 = vpop.f32.mrf.mxu1  ;;  %v779_v6 = vsel %vm777_vm2, %v41_v16, 0 }
 0x110   :  { %2642 = vpow2.f32 %v726_v30  ;;  %v728_v41 = vmul.f32 1.442695, %v718_v2  ;;  %v705_v43 = vadd.f32 %v704_v26, %v610_v27  ;;  %v719_v33 = vsub.f32 0.0, %v2950_v38 }
 0x111   :  { %v706_v46 = vpop.f32.mrf.mxu1  ;;  %v2956_v27 = vand.u32 4294901760, %v779_v6 }
 0x112   :  { %2644 = vpow2.f32 %v728_v41  ;;  %v720_v47 = vsub.f32 0.0, %v705_v43  ;;  %v707_v48 = vadd.f32 %v706_v46, %v612_v37  ;;  %v730_v32 = vmul.f32 1.442695, %v719_v33 }
 0x113   :  { %2646 = vpow2.f32 %v724_v35  ;;  %v711_v49 = vpop.f32.mrf.mxu1  ;;  %v2961_v41 = vsub.f32 %v779_v6, %v2956_v27 }
 0x114   :  { %v732_v51 = vmul.f32 1.442695, %v720_v47  ;;  %v721_v53 = vsub.f32 0.0, %v707_v48  ;;  %v712_v57 = vadd.f32 %v711_v49, %v617_v45  ;;  %2648 = vpow2.f32 %v730_v32 }
 0x115   :  { %v713_v56 = vpop.f32.mrf.mxu1  ;;  %v2976_v49 = vand.u32 4294901760, %v2961_v41 }
 0x116   :  { %2650 = vpow2.f32 %v732_v51  ;;  %v734_v60 = vmul.f32 1.442695, %v721_v53  ;;  %v722_v55 = vsub.f32 0.0, %v712_v57  ;;  %v714_v21 = vadd.f32 %v713_v56, %v619_v50 }
 0x118   :  { %2652 = vpow2.f32 %v734_v60  ;;  %v736_v31 = vmul.f32 1.442695, %v722_v55  ;;  %v723_v62 = vsub.f32 0.0, %v714_v21 }
 0x11a   :  { %2654 = vpow2.f32 %v736_v31  ;;  %v738_v5 = vmul.f32 1.442695, %v723_v62 }
 0x11c   :  { %2656 = vpow2.f32 %v738_v5 }
 0x11d   :  { %v2643_v0 = vpop.eup %2642 }
 0x11e   :  { %v741_v7 = vadd.f32 1.0, %v2643_v0 }
 0x11f   :  { %v2645_v59 = vpop.eup %2644 }
 0x120   :  { %v2647_v20 = vpop.eup %2646  ;;  %v742_v58 = vadd.f32 1.0, %v2645_v59  ;;  %2658 = vrcp.f32 %v741_v7 }
 0x121   :  { %v2649_v8 = vpop.eup %2648  ;;  %v740_v14 = vadd.f32 1.0, %v2647_v20 }
 0x122   :  { %v743_v63 = vadd.f32 1.0, %v2649_v8  ;;  %2660 = vrcp.f32 %v742_v58  ;;  %v3020_v8 = vld [vmem:[%s3276_s1 + $0x8] sm:$0xff]  ;;  %s2625_s1 = sld [smem:[#allocation2 + $0x100]] }
 0x123   :  { %v2651_v1 = vpop.eup %2650 }
 0x124   :  { %v744_v42 = vadd.f32 1.0, %v2651_v1  ;;  %2662 = vrcp.f32 %v743_v63  ;;  %v1351_v1 = vstv %s2971_s4 }
 0x125   :  { %v2653_v61 = vpop.eup %2652 }
 0x126   :  { %2664 = vrcp.f32 %v744_v42  ;;  %v745_v3 = vadd.f32 1.0, %v2653_v61 }
 0x127   :  { %v2655_v4 = vpop.eup %2654  ;;  %2666 = vrcp.f32 %v740_v14 }
 0x128   :  { %2668 = vrcp.f32 %v745_v3  ;;  %v746_v25 = vadd.f32 1.0, %v2655_v4 }
 0x129   :  { %v2657_v34 = vpop.eup %2656 }
 0x12a   :  { %2670 = vrcp.f32 %v746_v25  ;;  %v747_v13 = vadd.f32 1.0, %v2657_v34 }
 0x12c   :  { %2672 = vrcp.f32 %v747_v13  ;;  %v1352_v13 = vmul.f32 %v3020_v8, %v1351_v1 }
 0x12d   :  { %v2659_v23 = vpop.eup %2658 }
 0x12e   :  { %v765_v15 = vmul.f32 %v2659_v23, %v2943_v39 }
 0x12f   :  { %v2661_v19 = vpop.eup %2660 }
 0x130   :  { %v766_v37 = vmul.f32 %v2661_v19, %v2947_v22  ;;  %v2978_v39 = vand.u32 4294901760, %v765_v15 }
 0x131   :  { %v2663_v30 = vpop.eup %2662 }
 0x132   :  { %v767_v28 = vmul.f32 %v2663_v30, %v2950_v38  ;;  %v2973_v22 = vand.u32 4294901760, %v766_v37  ;;  %v3004_v31 = vsub.f32 %v765_v15, %v2978_v39 }
 0x133   :  { %v2665_v2 = vpop.eup %2664 }
 0x134   :  { %v2667_v9 = vpop.eup %2666  ;;  %v768_v35 = vmul.f32 %v2665_v2, %v705_v43  ;;  %v2967_v47 = vand.u32 4294901760, %v767_v28  ;;  %v2999_v55 = vsub.f32 %v766_v37, %v2973_v22  ;;  %v927_v4 = vand.u32 4294901760, %v3004_v31 }
 0x135   :  { %v2669_v26 = vpop.eup %2668  ;;  %v764_v46 = vmul.f32 %v2667_v9, %v2941_v40 }
 0x136   :  { %v769_v29 = vmul.f32 %v2669_v26, %v707_v48  ;;  %v2965_v45 = vand.u32 4294901760, %v768_v35  ;;  %v921_v14 = vand.u32 4294901760, %v2999_v55  ;;  %v928_v2 = vsub.f32 %v3004_v31, %v927_v4 }
 0x137   :  { %v2671_v33 = vpop.eup %2670  ;;  %v2985_v51 = vand.u32 4294901760, %v764_v46 }
 0x138   :  { %v2969_v32 = vand.u32 4294901760, %v769_v29  ;;  %v770_v38 = vmul.f32 %v2671_v33, %v712_v57  ;;  %v2988_v53 = vsub.f32 %v768_v35, %v2965_v45  ;;  %v2991_v57 = vsub.f32 %v767_v28, %v2967_v47 }
 0x139   :  { %v2673_v43 = vpop.eup %2672  ;;  %v3011_v59 = vsub.f32 %v764_v46, %v2985_v51  ;;  %v922_v19 = vsub.f32 %v2999_v55, %v921_v14  ;;  %v1379_v35 = vcombine.high %v1352_v13, %v1352_v13  ;;  %v929_v15 = vand.u32 4294901760, %v928_v2 }
 0x13a   :  { %v2981_v48 = vsub.f32 %v769_v29, %v2969_v32  ;;  %v2983_v40 = vand.u32 4294901760, %v770_v38  ;;  %v771_v50 = vmul.f32 %v2673_v43, %v714_v21  ;;  %v857_v21 = vsub.f32 %v2961_v41, %v2976_v49 }
 0x13b   :  { %v909_v7 = vand.u32 4294901760, %v2988_v53  ;;  %v915_v58 = vand.u32 4294901760, %v2991_v57  ;;  %v933_v25 = vand.u32 4294901760, %v3011_v59  ;;  %v923_v37 = vand.u32 4294901760, %v922_v19 }
 0x13c   :  { %v2994_v56 = vsub.f32 %v770_v38, %v2983_v40  ;;  %v2996_v60 = vand.u32 4294901760, %v771_v50  ;;  %v903_v0 = vand.u32 4294901760, %v2981_v48  ;;  %v3029_v42 = vand.u32 4294901760, %v857_v21 }
 0x13d   :  { %v910_v34 = vsub.f32 %v2988_v53, %v909_v7  ;;  %v916_v6 = vsub.f32 %v2991_v57, %v915_v58  ;;  %v934_v28 = vsub.f32 %v3011_v59, %v933_v25  ;;  %v1382_v33 = vsel %vm99_vm1, %v1379_v35, 0 }
 0x13e   :  { %v897_v62 = vand.u32 4294901760, %v2994_v56  ;;  %v890_v5 = vsub.f32 %v771_v50, %v2996_v60  ;;  %806 = vmatprep.subr.mxu0 %v2996_v60  ;;  %v904_v3 = vsub.f32 %v2981_v48, %v903_v0  ;;  %v1380_v46 = vsel %vm99_vm1, %v1352_v13, 0 }
 0x13f   :  { %808 = vmatpush1.msra.mxu0 %v2983_v40  ;;  %v911_v9 = vand.u32 4294901760, %v910_v34  ;;  %v917_v26 = vand.u32 4294901760, %v916_v6  ;;  %v935_v29 = vand.u32 4294901760, %v934_v28  ;;  %v1414_v38 = vand.u32 4294901760, %v1382_v33 }
 0x140   :  { %810 = vmatprep.subr.mxu0 %v2969_v32  ;;  %v891_v20 = vand.u32 4294901760, %v890_v5  ;;  %v898_v63 = vsub.f32 %v2994_v56, %v897_v62  ;;  %v905_v30 = vand.u32 4294901760, %v904_v3  ;;  %v3298_v43 = vmov 0.0  }
 0x141   :  { %812 = vmatpush1.msra.mxu0 %v2965_v45  ;;  %v3064_v50 = vand.u32 4294901760, %v1380_v46  ;;  %v1526_v21 = vsub.f32 %v1382_v33, %v1414_v38 }
 0x142   :  { %814 = vmatprep.subr.mxu0 %v2967_v47  ;;  %v892_v61 = vsub.f32 %v890_v5, %v891_v20  ;;  %v899_v23 = vand.u32 4294901760, %v898_v63 }
 0x143   :  { %816 = vmatpush1.msra.mxu0 %v2973_v22 }
 0x144   :  { %818 = vmatprep.subr.mxu0 %v2978_v39  ;;  %v893_v16 = vand.u32 4294901760, %v892_v61 }
 0x145   :  { %820 = vmatpush1.msra.mxu0 %v2985_v51 }
 0x146   :  { %859 = vmatmul.mubr.f32.vlgmr.msra.gmra.mxu0 %v3029_v42  ;;  %894 = vmatprep.subr.mxu1 %v893_v16 }
 0x147   :  { %1003 = vmatprep.subr.mxu0 %v890_v5  ;;  %900 = vmatpush1.msra.mxu1 %v899_v23  ;;  %v1326_v23 = vstv %s2625_s1 }
 0x148   :  { %1006 = vmatpush1.msra.mxu0 %v2994_v56  ;;  %906 = vmatprep.subr.mxu1 %v905_v30  ;;  %v1324_v30 = vstv %s2624_s30 }
 0x149   :  { %1009 = vmatprep.subr.mxu0 %v2981_v48  ;;  %912 = vmatpush1.msra.mxu1 %v911_v9  ;;  %v1527_v48 = vand.u32 4294901760, %v1526_v21 }
 0x14a   :  { %1012 = vmatpush1.msra.mxu0 %v2988_v53  ;;  %918 = vmatprep.subr.mxu1 %v917_v26 }
 0x14b   :  { %1015 = vmatprep.subr.mxu0 %v2991_v57  ;;  %924 = vmatpush1.msra.mxu1 %v923_v37  ;;  %v1528_v57 = vsub.f32 %v1526_v21, %v1527_v48 }
 0x14c   :  { %1018 = vmatpush1.msra.mxu0 %v2999_v55  ;;  %930 = vmatprep.subr.mxu1 %v929_v15  ;;  %v3305_v15 = vld [vmem:[#allocation8_spill] sm:$0xff] }
 0x14d   :  { %1021 = vmatprep.subr.mxu0 %v3004_v31  ;;  %936 = vmatpush1.msra.mxu1 %v935_v29  ;;  %v1532_v31 = vsub.f32 %v1380_v46, %v3064_v50  ;;  %v1325_v29 = vmul.f32 %v1324_v30, %v3305_v15 }
 0x14e   :  { %1024 = vmatpush1.msra.mxu0 %v3011_v59  ;;  %971 = vmatmul.mubr.f32.vlgmr.msra.gmra.mxu1 %v2956_v27 }
 0x14f   :  { %1057 = vmatprep.mubr.f32.mxu0 %v3298_v43  ;;  %1091 = vmatprep.subr.mxu1 %v2996_v60  ;;  %v1533_v53 = vand.u32 4294901760, %v1532_v31 }
 0x150   :  { %1175 = vmatprep.subr.mxu0 %v891_v20  ;;  %1060 = vmatmul.mubr.f32.vlgmr.msra.gmra.mxu0 %v2961_v41 }
 0x151   :  { %1093 = vmatpush1.msra.mxu1 %v2983_v40  ;;  %1179 = vmatpush1.msra.mxu0 %v897_v62  ;;  %v1534_v56 = vsub.f32 %v1532_v31, %v1533_v53 }
 0x152   :  { %1095 = vmatprep.subr.mxu1 %v2969_v32  ;;  %1183 = vmatprep.subr.mxu0 %v903_v0 }
 0x153   :  { %1097 = vmatpush1.msra.mxu1 %v2965_v45  ;;  %1187 = vmatpush1.msra.mxu0 %v909_v7 }
 0x154   :  { %1099 = vmatprep.subr.mxu1 %v2967_v47  ;;  %1191 = vmatprep.subr.mxu0 %v915_v58 }
 0x155   :  { %1101 = vmatpush1.msra.mxu1 %v2973_v22  ;;  %1195 = vmatpush1.msra.mxu0 %v921_v14 }
 0x156   :  { %1103 = vmatprep.subr.mxu1 %v2978_v39  ;;  %1199 = vmatprep.subr.mxu0 %v927_v4 }
 0x157   :  { %1105 = vmatpush1.msra.mxu1 %v2985_v51  ;;  %1138 = vmatprep.mubr.f32.mxu1 %v3298_v43 }
 0x158   :  { %1203 = vmatpush1.msra.mxu0 %v933_v25  ;;  %1236 = vmatprep.mubr.f32.mxu0 %v3298_v43 }
 0x159   :  { %1142 = vmatmul.mubr.f32.vlgmr.msra.gmra.mxu1 %v2976_v49  ;;  %1238 = vmatmul.mubr.f32.vlgmr.msra.gmra.mxu0 %v2956_v27 }
 0x15a   :  { %1269 = vmatprep.subr.mxu1 %v2996_v60  ;;  %1415 = vmatprep.subr.mxu0 %v1414_v38  ;;  %v1529_v60 = vand.u32 4294901760, %v1528_v57 }
 0x15b   :  { %1271 = vmatpush1.msra.mxu1 %v2983_v40  ;;  %1417 = vmatpush1.msra.mxu0 %v3064_v50  ;;  %v1535_v40 = vand.u32 4294901760, %v1534_v56 }
 0x15c   :  { %1273 = vmatprep.subr.mxu1 %v2969_v32  ;;  %1450 = vmatprep.mubr.f32.mxu0 %v3298_v43 }
 0x15d   :  { %1275 = vmatpush1.msra.mxu1 %v2965_v45  ;;  %1456 = vmatmul.mubr.f32.vlgmr.msra.gmra.mxu0 %v2863_v36  ;;  %v3299_v36 = vld [vmem:[#allocation10_spill] sm:$0xff] }
 0x15e   :  { %1277 = vmatprep.subr.mxu1 %v2967_v47  ;;  %1316 = vmatprep.mubr.f32.mxu1 %v3298_v43 }
 0x15f   :  { %1279 = vmatpush1.msra.mxu1 %v2973_v22  ;;  %1461 = vmatprep.mubr.f32.mxu0 %v3298_v43 }
 0x160   :  { %1281 = vmatprep.subr.mxu1 %v2978_v39  ;;  %1630 = vmatprep.subr.mxu0 %v1526_v21 }
 0x161   :  { %1283 = vmatpush1.msra.mxu1 %v2985_v51  ;;  %1467 = vmatmul.mubr.f32.gmra.mxu0 %v2879_v44  ;;  %v3300_v44 = vld [vmem:[#allocation9_spill] sm:$0xff] }
 0x162   :  { %1318 = vmatmul.mubr.f32.vlgmr.msra.gmra.mxu1 %v2956_v27  ;;  %1530 = vmatprep.subr.mxu1 %v1529_v60 }
 0x163   :  { %1472 = vmatprep.mubr.f32.mxu0 %v3298_v43  ;;  %1536 = vmatpush1.msra.mxu1 %v1535_v40 }
 0x164   :  { %1569 = vmatprep.mubr.f32.mxu1 %v3298_v43  ;;  %1633 = vmatpush1.msra.mxu0 %v1532_v31 }
 0x165   :  { %1478 = vmatmul.mubr.f32.gmra.mxu0 %v2888_v52  ;;  %1730 = vmatprep.subr.mxu1 %v1414_v38  ;;  %v3302_v52 = vld [vmem:[#allocation11_spill] sm:$0xff] }
 0x166   :  { %1571 = vmatmul.mubr.f32.vlgmr.msra.gmra.mxu1 %v2806_v10  ;;  %1483 = vmatprep.mubr.f32.mxu0 %v3298_v43 }
 0x167   :  { %1576 = vmatprep.mubr.f32.mxu1 %v3298_v43  ;;  %1732 = vmatpush1.msra.mxu1 %v3064_v50 }
 0x168   :  { %1835 = vmatprep.subr.mxu0 %v1527_v48  ;;  %1932 = vmatprep.subr.mxu1 %v1414_v38 }
 0x169   :  { %1489 = vmatmul.mubr.f32.gmra.mxu0 %v2895_v54  ;;  %v3304_v54 = vld [vmem:[#allocation14_spill] sm:$0xff] }
 0x16a   :  { %1578 = vmatmul.mubr.f32.gmra.mxu1 %v2808_v11  ;;  %1666 = vmatprep.mubr.f32.mxu0 %v3298_v43 }
 0x16b   :  { %1583 = vmatprep.mubr.f32.mxu1 %v3298_v43 }
 0x16d   :  { %1669 = vmatmul.mubr.f32.vlgmr.msra.gmra.mxu0 %v2825_v17  ;;  %v3301_v17 = vld [vmem:[#allocation13_spill] sm:$0xff] }
 0x16e   :  { %1585 = vmatmul.mubr.f32.gmra.mxu1 %v2810_v12  ;;  %1674 = vmatprep.mubr.f32.mxu0 %v3298_v43 }
 0x16f   :  { %1590 = vmatprep.mubr.f32.mxu1 %v3298_v43  ;;  %1839 = vmatpush1.msra.mxu0 %v1533_v53 }
 0x171   :  { %1677 = vmatmul.mubr.f32.gmra.mxu0 %v2828_v18  ;;  %v3303_v18 = vld [vmem:[#allocation12_spill] sm:$0xff] }
 0x172   :  { %1592 = vmatmul.mubr.f32.gmra.mxu1 %v2840_v24  ;;  %1682 = vmatprep.mubr.f32.mxu0 %v3298_v43 }
 0x173   :  { %1765 = vmatprep.mubr.f32.mxu1 %v3298_v43 }
 0x175   :  { %1685 = vmatmul.mubr.f32.gmra.mxu0 %v3299_v36 }
 0x176   :  { %1769 = vmatmul.mubr.f32.vlgmr.msra.gmra.mxu1 %v3300_v44  ;;  %1690 = vmatprep.mubr.f32.mxu0 %v3298_v43 }
 0x177   :  { %1774 = vmatprep.mubr.f32.mxu1 %v3298_v43  ;;  %1934 = vmatpush1.msra.mxu1 %v3064_v50 }
 0x179   :  { %1693 = vmatmul.mubr.f32.gmra.mxu0 %v3301_v17 }
 0x17a   :  { %1778 = vmatmul.mubr.f32.gmra.mxu1 %v3302_v52  ;;  %1872 = vmatprep.mubr.f32.mxu0 %v3298_v43 }
 0x17b   :  { %1783 = vmatprep.mubr.f32.mxu1 %v3298_v43 }
 0x17d   :  { %1874 = vmatmul.mubr.f32.vlgmr.msra.gmra.mxu0 %v2806_v10 }
 0x17e   :  { %1787 = vmatmul.mubr.f32.gmra.mxu1 %v3303_v18  ;;  %1879 = vmatprep.mubr.f32.mxu0 %v3298_v43  ;;  %v1371_v18 = vpop.permute.xlu1 %1370 }
 0x17f   :  { %1792 = vmatprep.mubr.f32.mxu1 %v3298_v43 }
 0x181   :  { %1881 = vmatmul.mubr.f32.gmra.mxu0 %v2808_v11 }
 0x182   :  { %1796 = vmatmul.mubr.f32.gmra.mxu1 %v3304_v54  ;;  %1886 = vmatprep.mubr.f32.mxu0 %v3298_v43 }
 0x183   :  { %1967 = vmatprep.mubr.f32.mxu1 %v3298_v43 }
 0x185   :  { %1888 = vmatmul.mubr.f32.gmra.mxu0 %v2810_v12 }
 0x186   :  { %1969 = vmatmul.mubr.f32.vlgmr.msra.gmra.mxu1 %v2806_v10  ;;  %1893 = vmatprep.mubr.f32.mxu0 %v3298_v43  ;;  %v3152_v10 = vpop.permute.xlu0 %1375 }
 0x187   :  { %1974 = vmatprep.mubr.f32.mxu1 %v3298_v43 }
 0x189   :  { %1895 = vmatmul.mubr.f32.gmra.mxu0 %v2840_v24 }
 0x18a   :  { %1976 = vmatmul.mubr.f32.gmra.mxu1 %v2808_v11  ;;  %2124 = vmatprep.mubr.f32.mxu0 %v3298_v43  ;;  %v3154_v47 = vpop.permute.xlu0 %1365 }
 0x18b   :  { %1981 = vmatprep.mubr.f32.mxu1 %v3298_v43 }
 0x18e   :  { %1983 = vmatmul.mubr.f32.gmra.mxu1 %v2810_v12  ;;  %v3156_v39 = vpop.permute.xlu0 %774 }
 0x18f   :  { %1988 = vmatprep.mubr.f32.mxu1 %v3298_v43 }
 0x192   :  { %1990 = vmatmul.mubr.f32.gmra.mxu1 %v2840_v24 }
 0x193   :  { %2240 = vmatprep.mubr.f32.mxu1 %v3298_v43 }
 0x206   :  { %v860_v45 = vpop.f32.mrf.mxu0 }
 0x207   :  { %v861_v51 = vadd.f32 %v860_v45, %v3156_v39 }
 0x208   :  { %v862_v32 = vpop.f32.mrf.mxu0 }
 0x209   :  { %v863_v12 = vadd.f32 %v862_v32, %v3156_v39 }
 0x20e   :  { %v972_v22 = vpop.f32.mrf.mxu1 }
 0x20f   :  { %v973_v62 = vadd.f32 %v972_v22, %v861_v51 }
 0x210   :  { %v1061_v11 = vpop.f32.mrf.mxu0  ;;  %v974_v55 = vpop.f32.mrf.mxu1 }
 0x211   :  { %v975_v24 = vadd.f32 %v974_v55, %v863_v12  ;;  %v1062_v7 = vadd.f32 %v1061_v11, %v973_v62  ;;  %v1361_v55 = vpop.permute.xlu1 %1360 }
 0x212   :  { %v1063_v5 = vpop.f32.mrf.mxu0 }
 0x213   :  { %v1064_v1 = vadd.f32 %v1063_v5, %v975_v24 }
 0x219   :  { %v1143_v0 = vpop.f32.mrf.mxu1  ;;  %v1239_v59 = vpop.f32.mrf.mxu0 }
 0x21a   :  { %v1144_v14 = vadd.f32 %v1143_v0, %v1062_v7 }
 0x21b   :  { %v1241_v20 = vpop.f32.mrf.mxu0  ;;  %v1145_v58 = vpop.f32.mrf.mxu1 }
 0x21c   :  { %v1146_v61 = vadd.f32 %v1145_v58, %v1064_v1  ;;  %v1240_v4 = vadd.f32 %v1239_v59, %v1144_v14 }
 0x21d   :  { %v1457_v63 = vpop.f32.mrf.mxu0 }
 0x21e   :  { %v1242_v13 = vadd.f32 %v1241_v20, %v1146_v61  ;;  %v1458_v62 = vadd.f32 %v1457_v63, %v1361_v55 }
 0x21f   :  { %v1459_v3 = vpop.f32.mrf.mxu0 }
 0x220   :  { %v1460_v0 = vadd.f32 %v1459_v3, %v1361_v55 }
 0x221   :  { %v1468_v25 = vpop.f32.mrf.mxu0 }
 0x222   :  { %v1319_v34 = vpop.f32.mrf.mxu1  ;;  %v1469_v58 = vadd.f32 %v1468_v25, %v3154_v47 }
 0x223   :  { %v1320_v16 = vadd.f32 %v1319_v34, %v1240_v4  ;;  %v1470_v6 = vpop.f32.mrf.mxu0 }
 0x224   :  { %v1321_v19 = vpop.f32.mrf.mxu1  ;;  %v1471_v34 = vadd.f32 %v1470_v6, %v3154_v47 }
 0x225   :  { %v1322_v2 = vadd.f32 %v1321_v19, %v1242_v13  ;;  %v1479_v9 = vpop.f32.mrf.mxu0  ;;  %v1327_v35 = vmul.f32 %v1326_v23, %v1320_v16 }
 0x226   :  { %v1572_v28 = vpop.f32.mrf.mxu1  ;;  %v1480_v30 = vadd.f32 %v1479_v9, %v1371_v18 }
 0x227   :  { %v1328_v26 = vmul.f32 %v1326_v23, %v1322_v2  ;;  %v1481_v37 = vpop.f32.mrf.mxu0  ;;  %v1573_v59 = vadd.f32 %v1572_v28, %v1458_v62 }
 0x228   :  { %v1574_v33 = vpop.f32.mrf.mxu1  ;;  %v1482_v15 = vadd.f32 %v1481_v37, %v1371_v18 }
 0x229   :  { %v1331_v46 = vcombine.low %v1327_v35, %v1328_v26  ;;  %v1490_v38 = vpop.f32.mrf.mxu0  ;;  %v1575_v1 = vadd.f32 %v1574_v33, %v1460_v0 }
 0x22a   :  { %v1579_v50 = vpop.f32.mrf.mxu1  ;;  %v1491_v6 = vadd.f32 %v1490_v38, %v3152_v10 }
 0x22b   :  { %v1492_v21 = vpop.f32.mrf.mxu0  ;;  %v1333_v31 = vadd.f32 %v1331_v46, %v1325_v29  ;;  %v1580_v13 = vadd.f32 %v1579_v50, %v1469_v58 }
 0x22c   :  { %v1581_v48 = vpop.f32.mrf.mxu1 }
 0x22d   :  { %v1670_v53 = vpop.f32.mrf.mxu0  ;;  %1334 = vst [vmem:[#allocation5] sm:$0xff] %v1333_v31  ;;  %v1582_v2 = vadd.f32 %v1581_v48, %v1471_v34 }
 0x22e   :  { %v1586_v57 = vpop.f32.mrf.mxu1  ;;  %v1671_v14 = vadd.f32 %v1670_v53, %v1573_v59 }
 0x22f   :  { %v1672_v56 = vpop.f32.mrf.mxu0  ;;  %v1587_v29 = vadd.f32 %v1586_v57, %v1480_v30 }
 0x230   :  { %v1588_v60 = vpop.f32.mrf.mxu1  ;;  %v1673_v16 = vadd.f32 %v1672_v56, %v1575_v1 }
 0x231   :  { %v1678_v40 = vpop.f32.mrf.mxu0  ;;  %v1589_v50 = vadd.f32 %v1588_v60, %v1482_v15 }
 0x232   :  { %v1593_v36 = vpop.f32.mrf.mxu1  ;;  %v1679_v35 = vadd.f32 %v1678_v40, %v1580_v13 }
 0x233   :  { %v1680_v44 = vpop.f32.mrf.mxu0  ;;  %v1594_v37 = vadd.f32 %v1593_v36, %v1491_v6 }
 0x234   :  { %v1595_v17 = vpop.f32.mrf.mxu1  ;;  %v1681_v33 = vadd.f32 %v1680_v44, %v1582_v2 }
 0x235   :  { %v1686_v52 = vpop.f32.mrf.mxu0 }
 0x236   :  { %v1770_v54 = vpop.f32.mrf.mxu1  ;;  %v1687_v9 = vadd.f32 %v1686_v52, %v1587_v29 }
 0x237   :  { %v1688_v45 = vpop.f32.mrf.mxu0  ;;  %v1771_v23 = vadd.f32 %v1770_v54, %v1671_v14 }
 0x238   :  { %v1772_v32 = vpop.f32.mrf.mxu1  ;;  %v1689_v57 = vadd.f32 %v1688_v45, %v1589_v50 }
 0x239   :  { %v1694_v22 = vpop.f32.mrf.mxu0  ;;  %v1773_v3 = vadd.f32 %v1772_v32, %v1673_v16  ;;  %v1493_v32 = vadd.f32 %v1492_v21, %v3152_v10 }
 0x23a   :  { %v1779_v11 = vpop.f32.mrf.mxu1  ;;  %v1695_v52 = vadd.f32 %v1694_v22, %v1594_v37 }
 0x23b   :  { %v1696_v51 = vpop.f32.mrf.mxu0  ;;  %v1780_v46 = vadd.f32 %v1779_v11, %v1679_v35  ;;  %v1596_v60 = vadd.f32 %v1595_v17, %v1493_v32 }
 0x23c   :  { %v1781_v12 = vpop.f32.mrf.mxu1 }
 0x23d   :  { %v1875_v5 = vpop.f32.mrf.mxu0  ;;  %v1782_v54 = vadd.f32 %v1781_v12, %v1681_v33  ;;  %v1697_v36 = vadd.f32 %v1696_v51, %v1596_v60 }
 0x23e   :  { %v1788_v24 = vpop.f32.mrf.mxu1  ;;  %v1876_v28 = vadd.f32 %v1875_v5, %v1771_v23 }
 0x23f   :  { %v1877_v7 = vpop.f32.mrf.mxu0  ;;  %v1789_v11 = vadd.f32 %v1788_v24, %v1687_v9 }
 0x240   :  { %v1790_v20 = vpop.f32.mrf.mxu1  ;;  %v1878_v31 = vadd.f32 %v1877_v7, %v1773_v3 }
 0x241   :  { %v1882_v61 = vpop.f32.mrf.mxu0  ;;  %v1791_v12 = vadd.f32 %v1790_v20, %v1689_v57 }
 0x242   :  { %v1797_v4 = vpop.f32.mrf.mxu1  ;;  %v1883_v48 = vadd.f32 %v1882_v61, %v1780_v46 }
 0x243   :  { %v1884_v19 = vpop.f32.mrf.mxu0  ;;  %v1798_v45 = vadd.f32 %v1797_v4, %v1695_v52 }
 0x244   :  { %v1799_v63 = vpop.f32.mrf.mxu1  ;;  %v1885_v55 = vadd.f32 %v1884_v19, %v1782_v54 }
 0x245   :  { %v1889_v26 = vpop.f32.mrf.mxu0  ;;  %v1800_v22 = vadd.f32 %v1799_v63, %v1697_v36 }
 0x246   :  { %v1970_v25 = vpop.f32.mrf.mxu1  ;;  %v1890_v59 = vadd.f32 %v1889_v26, %v1789_v11 }
 0x247   :  { %v3163_v53 = vadd.f32 %v1970_v25, %v1876_v28  ;;  %v1891_v47 = vpop.f32.mrf.mxu0 }
 0x248   :  { %v1972_v56 = vpop.f32.mrf.mxu1  ;;  %v1892_v24 = vadd.f32 %v1891_v47, %v1791_v12 }
 0x249   :  { %v3166_v40 = vadd.f32 %v1972_v56, %v1878_v31  ;;  %v1996_v44 = vsub.f32 0.0, %v3163_v53  ;;  %v1896_v5 = vpop.f32.mrf.mxu0 }
 0x24a   :  { %v1977_v18 = vpop.f32.mrf.mxu1  ;;  %v1897_v20 = vadd.f32 %v1896_v5, %v1798_v45 }
 0x24b   :  { %v1997_v62 = vsub.f32 0.0, %v3166_v40  ;;  %v3171_v38 = vadd.f32 %v1977_v18, %v1883_v48  ;;  %v2004_v58 = vmul.f32 1.442695, %v1996_v44  ;;  %v1898_v61 = vpop.f32.mrf.mxu0 }
 0x24c   :  { %v1979_v0 = vpop.f32.mrf.mxu1  ;;  %v1899_v30 = vadd.f32 %v1898_v61, %v1800_v22 }
 0x24d   :  { %v2006_v7 = vmul.f32 1.442695, %v1997_v62  ;;  %v1998_v10 = vsub.f32 0.0, %v3171_v38  ;;  %v3174_v21 = vadd.f32 %v1979_v0, %v1885_v55 }
 0x24e   :  { %v1984_v1 = vpop.f32.mrf.mxu1 }
 0x24f   :  { %2674 = vpow2.f32 %v2006_v7  ;;  %v2008_v14 = vmul.f32 1.442695, %v1998_v10  ;;  %v1999_v34 = vsub.f32 0.0, %v3174_v21  ;;  %v1985_v17 = vadd.f32 %v1984_v1, %v1890_v59 }
 0x250   :  { %v1986_v13 = vpop.f32.mrf.mxu1 }
 0x251   :  { %2676 = vpow2.f32 %v2008_v14  ;;  %v2010_v16 = vmul.f32 1.442695, %v1999_v34  ;;  %v2000_v23 = vsub.f32 0.0, %v1985_v17  ;;  %v1987_v19 = vadd.f32 %v1986_v13, %v1892_v24 }
 0x252   :  { %2678 = vpow2.f32 %v2004_v58  ;;  %v1991_v51 = vpop.f32.mrf.mxu1 }
 0x253   :  { %2680 = vpow2.f32 %v2010_v16  ;;  %v2012_v4 = vmul.f32 1.442695, %v2000_v23  ;;  %v2001_v2 = vsub.f32 0.0, %v1987_v19  ;;  %v1992_v35 = vadd.f32 %v1991_v51, %v1897_v20 }
 0x254   :  { %v1993_v3 = vpop.f32.mrf.mxu1 }
 0x255   :  { %2682 = vpow2.f32 %v2012_v4  ;;  %v2014_v28 = vmul.f32 1.442695, %v2001_v2  ;;  %v2002_v26 = vsub.f32 0.0, %v1992_v35  ;;  %v1994_v15 = vadd.f32 %v1993_v3, %v1899_v30 }
 0x257   :  { %2684 = vpow2.f32 %v2014_v28  ;;  %v2016_v63 = vmul.f32 1.442695, %v2002_v26  ;;  %v2003_v29 = vsub.f32 0.0, %v1994_v15 }
 0x259   :  { %2686 = vpow2.f32 %v2016_v63  ;;  %v2018_v25 = vmul.f32 1.442695, %v2003_v29 }
 0x25b   :  { %2688 = vpow2.f32 %v2018_v25 }
 0x25c   :  { %v2675_v33 = vpop.eup %2674 }
 0x25d   :  { %v2021_v31 = vadd.f32 1.0, %v2675_v33 }
 0x25e   :  { %v2677_v46 = vpop.eup %2676 }
 0x25f   :  { %v2679_v47 = vpop.eup %2678  ;;  %v2022_v50 = vadd.f32 1.0, %v2677_v46  ;;  %2690 = vrcp.f32 %v2021_v31 }
 0x260   :  { %v2681_v6 = vpop.eup %2680  ;;  %v2020_v54 = vadd.f32 1.0, %v2679_v47 }
 0x261   :  { %v2023_v56 = vadd.f32 1.0, %v2681_v6 }
 0x262   :  { %v2683_v9 = vpop.eup %2682 }
 0x263   :  { %2692 = vrcp.f32 %v2023_v56  ;;  %v2024_v48 = vadd.f32 1.0, %v2683_v9 }
 0x264   :  { %v2685_v32 = vpop.eup %2684  ;;  %2694 = vrcp.f32 %v2022_v50 }
 0x265   :  { %2696 = vrcp.f32 %v2024_v48  ;;  %v2025_v37 = vadd.f32 1.0, %v2685_v32 }
 0x266   :  { %v2687_v57 = vpop.eup %2686  ;;  %2698 = vrcp.f32 %v2020_v54 }
 0x267   :  { %2700 = vrcp.f32 %v2025_v37  ;;  %v2026_v44 = vadd.f32 1.0, %v2687_v57 }
 0x268   :  { %v2689_v18 = vpop.eup %2688 }
 0x269   :  { %2702 = vrcp.f32 %v2026_v44  ;;  %v2027_v11 = vadd.f32 1.0, %v2689_v18 }
 0x26b   :  { %2704 = vrcp.f32 %v2027_v11 }
 0x26c   :  { %v2691_v55 = vpop.eup %2690 }
 0x26d   :  { %v2045_v10 = vmul.f32 %v2691_v55, %v3166_v40 }
 0x270   :  { %v2693_v62 = vpop.eup %2692 }
 0x271   :  { %v2695_v5 = vpop.eup %2694  ;;  %v2047_v12 = vmul.f32 %v2693_v62, %v3174_v21  ;;  %v3189_v21 = vand.u32 4294901760, %v2045_v10 }
 0x272   :  { %v2697_v60 = vpop.eup %2696  ;;  %v2046_v7 = vmul.f32 %v2695_v5, %v3171_v38 }
 0x273   :  { %v2699_v52 = vpop.eup %2698  ;;  %v2048_v0 = vmul.f32 %v2697_v60, %v1985_v17  ;;  %v3183_v1 = vand.u32 4294901760, %v2047_v12  ;;  %v3211_v30 = vsub.f32 %v2045_v10, %v3189_v21 }
 0x274   :  { %v2701_v59 = vpop.eup %2700  ;;  %v2044_v58 = vmul.f32 %v2699_v52, %v3163_v53  ;;  %v3187_v22 = vand.u32 4294901760, %v2046_v7 }
 0x275   :  { %v2049_v36 = vmul.f32 %v2701_v59, %v1987_v19  ;;  %v3181_v24 = vand.u32 4294901760, %v2048_v0  ;;  %v3202_v13 = vsub.f32 %v2047_v12, %v3183_v1  ;;  %v2198_v33 = vand.u32 4294901760, %v3211_v30 }
 0x276   :  { %v2703_v45 = vpop.eup %2702  ;;  %v3196_v20 = vand.u32 4294901760, %v2044_v58  ;;  %v3208_v19 = vsub.f32 %v2046_v7, %v3187_v22 }
 0x277   :  { %v3185_v14 = vand.u32 4294901760, %v2049_v36  ;;  %v2050_v61 = vmul.f32 %v2703_v45, %v1992_v35  ;;  %v3199_v53 = vsub.f32 %v2048_v0, %v3181_v24  ;;  %v2186_v26 = vand.u32 4294901760, %v3202_v13 }
 0x278   :  { %v2705_v34 = vpop.eup %2704  ;;  %v3217_v35 = vsub.f32 %v2044_v58, %v3196_v20  ;;  %v2199_v54 = vsub.f32 %v3211_v30, %v2198_v33 }
 0x279   :  { %v3192_v38 = vsub.f32 %v2049_v36, %v3185_v14  ;;  %v3194_v40 = vand.u32 4294901760, %v2050_v61  ;;  %v2051_v17 = vmul.f32 %v2705_v34, %v1994_v15  ;;  %v2180_v3 = vand.u32 4294901760, %v3199_v53 }
 0x27a   :  { %v2192_v15 = vand.u32 4294901760, %v3208_v19  ;;  %v2204_v46 = vand.u32 4294901760, %v3217_v35  ;;  %v2187_v6 = vsub.f32 %v3202_v13, %v2186_v26 }
 0x27b   :  { %v2167_v16 = vsub.f32 %v2050_v61, %v3194_v40  ;;  %v3205_v23 = vand.u32 4294901760, %v2051_v17  ;;  %v2174_v2 = vand.u32 4294901760, %v3192_v38  ;;  %v2181_v31 = vsub.f32 %v3199_v53, %v2180_v3 }
 0x27c   :  { %v2193_v56 = vsub.f32 %v3208_v19, %v2192_v15  ;;  %v2205_v32 = vsub.f32 %v3217_v35, %v2204_v46  ;;  %v2188_v37 = vand.u32 4294901760, %v2187_v6  ;;  %v2597_v61 = vstv %s2628_s7 }
 0x27d   :  { %v2168_v51 = vand.u32 4294901760, %v2167_v16  ;;  %v2161_v4 = vsub.f32 %v2051_v17, %v3205_v23  ;;  %2077 = vmatprep.subr.mxu0 %v3205_v23  ;;  %v2175_v25 = vsub.f32 %v3192_v38, %v2174_v2  ;;  %v2182_v48 = vand.u32 4294901760, %v2181_v31 }
 0x27e   :  { %2079 = vmatpush1.msra.mxu0 %v3194_v40  ;;  %v2194_v57 = vand.u32 4294901760, %v2193_v56  ;;  %v2206_v44 = vand.u32 4294901760, %v2205_v32 }
 0x27f   :  { %2081 = vmatprep.subr.mxu0 %v3185_v14  ;;  %v2162_v28 = vand.u32 4294901760, %v2161_v4  ;;  %v2169_v63 = vsub.f32 %v2167_v16, %v2168_v51  ;;  %v2176_v9 = vand.u32 4294901760, %v2175_v25 }
 0x280   :  { %2083 = vmatpush1.msra.mxu0 %v3181_v24 }
 0x281   :  { %2085 = vmatprep.subr.mxu0 %v3183_v1  ;;  %v2163_v29 = vsub.f32 %v2161_v4, %v2162_v28  ;;  %v2170_v50 = vand.u32 4294901760, %v2169_v63 }
 0x282   :  { %2087 = vmatpush1.msra.mxu0 %v3187_v22 }
 0x283   :  { %2089 = vmatprep.subr.mxu0 %v3189_v21  ;;  %v2164_v47 = vand.u32 4294901760, %v2163_v29 }
 0x284   :  { %2091 = vmatpush1.msra.mxu0 %v3196_v20 }
 0x285   :  { %2130 = vmatmul.mubr.f32.vlgmr.msra.gmra.mxu0 %v3029_v42  ;;  %2165 = vmatprep.subr.mxu1 %v2164_v47  ;;  %v2200_v42 = vand.u32 4294901760, %v2199_v54 }
 0x286   :  { %2274 = vmatprep.subr.mxu0 %v2161_v4  ;;  %2171 = vmatpush1.msra.mxu1 %v2170_v50 }
 0x287   :  { %2277 = vmatpush1.msra.mxu0 %v2167_v16  ;;  %2177 = vmatprep.subr.mxu1 %v2176_v9 }
 0x288   :  { %2280 = vmatprep.subr.mxu0 %v3192_v38  ;;  %2183 = vmatpush1.msra.mxu1 %v2182_v48 }
 0x289   :  { %2283 = vmatpush1.msra.mxu0 %v3199_v53  ;;  %2189 = vmatprep.subr.mxu1 %v2188_v37 }
 0x28a   :  { %2286 = vmatprep.subr.mxu0 %v3202_v13  ;;  %2195 = vmatpush1.msra.mxu1 %v2194_v57 }
 0x28b   :  { %2289 = vmatpush1.msra.mxu0 %v3208_v19  ;;  %2201 = vmatprep.subr.mxu1 %v2200_v42 }
 0x28c   :  { %2292 = vmatprep.subr.mxu0 %v3211_v30  ;;  %2207 = vmatpush1.msra.mxu1 %v2206_v44 }
 0x28d   :  { %2295 = vmatpush1.msra.mxu0 %v3217_v35  ;;  %2242 = vmatmul.mubr.f32.vlgmr.msra.gmra.mxu1 %v2956_v27 }
 0x28e   :  { %2328 = vmatprep.mubr.f32.mxu0 %v3298_v43  ;;  %2362 = vmatprep.subr.mxu1 %v3205_v23 }
 0x28f   :  { %2446 = vmatprep.subr.mxu0 %v2162_v28  ;;  %2331 = vmatmul.mubr.f32.vlgmr.msra.gmra.mxu0 %v2961_v41 }
 0x290   :  { %2364 = vmatpush1.msra.mxu1 %v3194_v40  ;;  %2450 = vmatpush1.msra.mxu0 %v2168_v51 }
 0x291   :  { %2366 = vmatprep.subr.mxu1 %v3185_v14  ;;  %2454 = vmatprep.subr.mxu0 %v2174_v2 }
 0x292   :  { %2368 = vmatpush1.msra.mxu1 %v3181_v24  ;;  %2458 = vmatpush1.msra.mxu0 %v2180_v3 }
 0x293   :  { %2370 = vmatprep.subr.mxu1 %v3183_v1  ;;  %2462 = vmatprep.subr.mxu0 %v2186_v26 }
 0x294   :  { %2372 = vmatpush1.msra.mxu1 %v3187_v22  ;;  %2466 = vmatpush1.msra.mxu0 %v2192_v15 }
 0x295   :  { %2374 = vmatprep.subr.mxu1 %v3189_v21  ;;  %2470 = vmatprep.subr.mxu0 %v2198_v33 }
 0x296   :  { %2376 = vmatpush1.msra.mxu1 %v3196_v20  ;;  %2409 = vmatprep.mubr.f32.mxu1 %v3298_v43 }
 0x297   :  { %2474 = vmatpush1.msra.mxu0 %v2204_v46  ;;  %2413 = vmatmul.mubr.f32.vlgmr.msra.gmra.mxu1 %v2976_v49 }
 0x298   :  { %2540 = vmatprep.subr.mxu1 %v3205_v23  ;;  %2507 = vmatprep.mubr.f32.mxu0 %v3298_v43 }
 0x299   :  { %2542 = vmatpush1.msra.mxu1 %v3194_v40  ;;  %2509 = vmatmul.mubr.f32.vlgmr.msra.gmra.mxu0 %v2956_v27 }
 0x29a   :  { %2544 = vmatprep.subr.mxu1 %v3185_v14  ;;  %2587 = vmatprep.mubr.f32.mxu1 %v3298_v43 }
 0x29b   :  { %2546 = vmatpush1.msra.mxu1 %v3181_v24 }
 0x29c   :  { %2548 = vmatprep.subr.mxu1 %v3183_v1 }
 0x29d   :  { %2550 = vmatpush1.msra.mxu1 %v3187_v22 }
 0x29e   :  { %2552 = vmatprep.subr.mxu1 %v3189_v21 }
 0x29f   :  { %2554 = vmatpush1.msra.mxu1 %v3196_v20 }
 0x2a0   :  { %2589 = vmatmul.mubr.f32.vlgmr.msra.gmra.mxu1 %v2956_v27 }
 0x345   :  { %v2131_v41 = vpop.f32.mrf.mxu0 }
 0x346   :  { %v2132_v11 = vadd.f32 %v2131_v41, %v3156_v39 }
 0x347   :  { %v2133_v18 = vpop.f32.mrf.mxu0 }
 0x348   :  { %v2134_v43 = vadd.f32 %v2133_v18, %v3156_v39  ;;  %v2595_v39 = vstv %s2627_s8 }
 0x349   :  { %v2596_v40 = vmul.f32 %v3020_v8, %v2595_v39 }
 0x34d   :  { %v2243_v49 = vpop.f32.mrf.mxu1 }
 0x34e   :  { %v2244_v5 = vadd.f32 %v2243_v49, %v2132_v11 }
 0x34f   :  { %v2245_v55 = vpop.f32.mrf.mxu1  ;;  %v2332_v62 = vpop.f32.mrf.mxu0 }
 0x350   :  { %v2246_v60 = vadd.f32 %v2245_v55, %v2134_v43  ;;  %v2333_v0 = vadd.f32 %v2332_v62, %v2244_v5 }
 0x351   :  { %v2334_v12 = vpop.f32.mrf.mxu0 }
 0x352   :  { %v2335_v10 = vadd.f32 %v2334_v12, %v2246_v60 }
 0x357   :  { %v2414_v52 = vpop.f32.mrf.mxu1 }
 0x358   :  { %v2415_v27 = vadd.f32 %v2414_v52, %v2333_v0 }
 0x359   :  { %v2416_v59 = vpop.f32.mrf.mxu1  ;;  %v2510_v7 = vpop.f32.mrf.mxu0 }
 0x35a   :  { %v2417_v36 = vadd.f32 %v2416_v59, %v2335_v10  ;;  %v2511_v58 = vadd.f32 %v2510_v7, %v2415_v27 }
 0x35b   :  { %v2512_v45 = vpop.f32.mrf.mxu0 }
 0x35c   :  { %v2513_v1 = vadd.f32 %v2512_v45, %v2417_v36 }
 0x360   :  { %v2590_v24 = vpop.f32.mrf.mxu1 }
 0x361   :  { %v2591_v14 = vadd.f32 %v2590_v24, %v2511_v58 }
 0x362   :  { %v2592_v34 = vpop.f32.mrf.mxu1 }
 0x363   :  { %v2593_v22 = vadd.f32 %v2592_v34, %v2513_v1  ;;  %v2598_v21 = vmul.f32 %v2597_v61, %v2591_v14 }
 0x365   :  { %v2599_v38 = vmul.f32 %v2597_v61, %v2593_v22 }
 0x367   :  { %v2602_v17 = vcombine.low %v2598_v21, %v2599_v38 }
 0x369   :  { %v2604_v20 = vadd.f32 %v2602_v17, %v2596_v40 }
 0x36b   :  { %2606 = vst [vmem:[#allocation5 + $0x8] sm:$0xff] %v2604_v20 }
 0x36c   :  { %2729 = shalt.err (!%p2726_p9)
}
 0x36d   :  { %s2746_s2 = smov 128   ;;  %s2747_s12 = smov 8  }
 0x36e   :  { %2618 = dma.vmem_to_hbm [thread:$0]  %s2613_s10, 256, %s3281_s6, [#allocation3], %s2746_s2, %s2746_s2, %s2747_s12  }
 0x36f   :  { %2740 = dma.done.wait [#allocation3], 256  }
 0x370   :  { %2741 = vsyncadd [#allocation3], 4294967040 }
 0x371   :  { %2622 = vsyncpa [#allocation3], 1 }
 0x372   :  { %2623 = vsyncpa [#allocation4], 1 }

</bundles_post_ra>
